<compile_context>
chip_gen: v5e
topology: v5e:2x2
jax: 0.10.0
libtpu: 0.0.40
codegen_flags: <defaults>
</compile_context>

<pallas_src>
import jax
import jax.numpy as jnp
from jax.experimental import pallas as pl
from jax.experimental.pallas import tpu as pltpu


def _identity_kernel(x_ref, o_ref):
    # Pure copy of the current VMEM tile.  The copy is memory-bound, so any
    # future fused elementwise residual math would ride along on the VPU free.
    o_ref[...] = x_ref[...]


# Widest lane dimension tried for the 2-D slab (multiple of 128 -> unmasked,
# full-width vector stores).
_LANE_CAP = 1024
# Row-tile alignment: 32 is a common multiple of the sublane packing for
# 32-bit (8), 16-bit (16) and 8-bit (32) dtypes.
_ROW_ALIGN = 32
# Target bytes per block (see header comment for the VMEM budget math).
_TARGET_BLOCK_BYTES = 2 * 1024 * 1024
# Below this element count the fixed dispatch cost dominates; identity is
# exact, so just return x.
_MIN_PALLAS_ELEMS = 128
# Dtypes whose sub-byte packing breaks the flatten/reshape assumptions.
_SUB_BYTE_TAGS = ("int4", "uint4", "int2", "uint2", "float4")


def _row_tile(rows: int, lane: int, itemsize: int) -> int:
    """Byte-sized (~2 MiB) row tile, multiple of 32, guaranteeing >= 2 grid
    steps whenever there is enough data (so v7x's two TensorCores both work)."""
    if rows <= _ROW_ALIGN:
        return rows  # full-extent block; always a legal block shape
    cap = max(
        _ROW_ALIGN,
        (_TARGET_BLOCK_BYTES // (lane * itemsize)) // _ROW_ALIGN * _ROW_ALIGN,
    )
    # round_up(ceil(rows/2), 32) <= rows for every rows > 32, so this is a
    # legal 32-aligned tile strictly smaller than rows -> grid of >= 2 blocks.
    half = ((pl.cdiv(rows, 2) + _ROW_ALIGN - 1) // _ROW_ALIGN) * _ROW_ALIGN
    return min(cap, half)


def _pallas_copy_2d(x2d, tile_r, lane, grid_r, *, donate):
    alias = {0: 0} if donate else {}
    return pl.pallas_call(
        _identity_kernel,
        out_shape=jax.ShapeDtypeStruct(x2d.shape, x2d.dtype),
        grid=(grid_r,),
        in_specs=[pl.BlockSpec((tile_r, lane), lambda i: (i, 0))],
        out_specs=pl.BlockSpec((tile_r, lane), lambda i: (i, 0)),
        input_output_aliases=alias,
        compiler_params=pltpu.CompilerParams(
            # Single data-parallel axis; v7x shards it across its 2 TCs,
            # a no-op on single-core v5e/v6e.
            dimension_semantics=("parallel",),
        ),
    )(x2d)


def residual_layer_forward(x, *, donate: bool = False):
    """Pallas implementation of ResiualLayer.forward (identity).

    Set donate=True (and donate the argument at the jit boundary) to alias the
    output onto the input buffer and skip the fresh HBM output allocation.
    """
    total = x.size
    dtype = jnp.dtype(x.dtype)

    # Degenerate / tiny inputs and sub-byte packed dtypes: the module is the
    # identity, so returning x is exact and avoids a pointless dispatch (and
    # the old size==0 cdiv-by-zero failure).
    if total < _MIN_PALLAS_ELEMS or any(t in dtype.name for t in _SUB_BYTE_TAGS):
        return x

    orig_shape = x.shape
    itemsize = dtype.itemsize

    if total % 128 == 0:
        # Pad-free lane-dense path (covers NCHW / transformer shapes).
        lane = 128
        for cand in range(_LANE_CAP, 127, -128):
            if total % cand == 0:
                lane = cand
                break
        rows = total // lane
        tile_r = _row_tile(rows, lane, itemsize)
        grid_r = pl.cdiv(rows, tile_r)  # ragged last block is masked by Pallas
        out2d = _pallas_copy_2d(
            x.reshape(rows, lane), tile_r, lane, grid_r, donate=donate
        )
        return out2d.reshape(orig_shape)

    if total * itemsize <= _TARGET_BLOCK_BYTES:
        # Small awkward size: one full-extent block -> still no pad / slice.
        out2d = _pallas_copy_2d(x.reshape(1, total), 1, total, 1, donate=donate)
        return out2d.reshape(orig_shape)

    # Large awkward size (rare): pad a <128-element tail.  jnp.pad and the
    # final slice each cost an extra HBM pass; unavoidable with this layout.
    # TODO(synk): a manual-DMA kernel (memory_space=pl.ANY) could copy the
    # ragged tail without those passes if such shapes ever matter.
    lane = 128
    rows = pl.cdiv(total, lane)
    padded = rows * lane
    flat = jnp.pad(x.reshape(-1), (0, padded - total))
    tile_r = _row_tile(rows, lane, itemsize)
    grid_r = pl.cdiv(rows, tile_r)
    out2d = _pallas_copy_2d(
        flat.reshape(rows, lane), tile_r, lane, grid_r, donate=donate
    )
    return out2d.reshape(-1)[:total].reshape(orig_shape)


if __name__ == "__main__":
    key = jax.random.PRNGKey(0)

    # Small NCHW input consistent with a conv-style residual block.
    # 2*4*16*16 = 2048 elements -> pad-free lane-dense path (lane=1024).
    x = jax.random.normal(key, (2, 4, 16, 16), dtype=jnp.float32)
    y = jax.block_until_ready(residual_layer_forward(x))
    assert y.shape == x.shape and y.dtype == x.dtype
    assert bool(jnp.all(y == x))

    # Non-128-aligned element count -> single full-extent block path
    # (no pad / slice copies).
    x2 = jax.random.normal(jax.random.PRNGKey(0), (2, 3, 67), dtype=jnp.float32)
    y2 = jax.block_until_ready(residual_layer_forward(x2))
    assert y2.shape == x2.shape and y2.dtype == x2.dtype
    assert bool(jnp.all(y2 == x2))

    print("KERNEL_OK")
</pallas_src>

<mosaic_0001>
module attributes {stable_mosaic.version = 11 : i64} {
  func.func @_identity_kernel(%arg0: i32, %arg1: memref<2x1024xf32, #tpu.memory_space<vmem>>, %arg2: memref<2x1024xf32, #tpu.memory_space<vmem>>) attributes {dimension_semantics = [#tpu.dimension_semantics<parallel>], iteration_bounds = array<i64: 1>, scalar_prefetch = 0 : i64, scratch_operands = 0 : i64, tpu.core_type = #tpu.core_type<tc>, window_params = [{transform_indices = @transform_0, window_bounds = array<i64: 2, 1024>}, {transform_indices = @transform_1, window_bounds = array<i64: 2, 1024>}]} {
    %c0 = arith.constant 0 : index
    %c0_0 = arith.constant 0 : index
    %0 = vector.load %arg1[%c0, %c0_0] : memref<2x1024xf32, #tpu.memory_space<vmem>>, vector<2x1024xf32>
    %c0_1 = arith.constant 0 : index
    %c0_2 = arith.constant 0 : index
    %1 = vector.load %arg2[%c0_1, %c0_2] : memref<2x1024xf32, #tpu.memory_space<vmem>>, vector<2x1024xf32>
    tpu.vector_store %arg2[%c0_1, %c0_2], %0 {strides = array<i32>} : memref<2x1024xf32, #tpu.memory_space<vmem>>, vector<2x1024xf32>,
    return
  }
  func.func @transform_0(%arg0: i32) -> (i32, i32) {
    %c0_i32 = arith.constant 0 : i32
    %c0_i32_0 = arith.constant 0 : i32
    return %arg0, %c0_i32 : i32, i32
  }
  func.func @transform_1(%arg0: i32) -> (i32, i32) {
    %c0_i32 = arith.constant 0 : i32
    %c0_i32_0 = arith.constant 0 : i32
    return %arg0, %c0_i32 : i32, i32
  }
}

</mosaic_0001>

<bundles_post_ra>
// kernel: tpu_custom_call.1
= control target key start
LH: loop header
LB: loop body
LE: loop exit
PB: predicated region body
PF: predicated region fallthrough
CT: control target
= control target key end

     0   :  { %6 = vsyncpa [#allocation3], 0  ;;  %s116_s0 = inlined_call_operand.hbm [shape: f32[2,1024], index: 0, kind: input, shape index: {}]   ;;  %s117_s1 = inlined_call_operand.hbm [shape: f32[2,1024], index: 1, kind: output, shape index: {}]  }
   0x1   :  { %7 = vsyncpa [#allocation4], 0  ;;  %s13_s8 = sshll.u32 %s116_s0, 4  ;;  %s98_s9 = smov [#allocation2]   ;;  %s14_s8 = int_to_ptr.hbm [resolvable:$true] %s13_s8 }
   0x2   :  { %s15_s10 = sshll.u32 %s98_s9, 4  ;;  %s16_s10 = int_to_ptr.vmem [resolvable:$true] %s15_s10 }
   0x3   :  { %18 = dma.hbm_to_vmem [thread:$0]  %s14_s8, 256, %s16_s10, [#allocation3]  }
   0x4   :  { %94 = dma.done.wait [#allocation3], 256  }
   0x5   :  { %95 = vsyncadd [#allocation3], 4294967040  ;;  %s99_s11 = smov [#allocation5]   ;;  %s34_s15 = sshll.u32 %s117_s1, 4  ;;  %v23_v0 = vld [vmem:[#allocation2] sm:$0xff]  ;;  %v24_v1 = vld [vmem:[#allocation2 + $0x8] sm:$0xff]  ;;  %s35_s15 = int_to_ptr.hbm [resolvable:$true] %s34_s15 }
   0x6   :  { %s32_s12 = sshll.u32 %s99_s11, 4  ;;  %25 = vst [vmem:[#allocation5] sm:$0xff] %v23_v0  ;;  %s33_s12 = int_to_ptr.vmem [resolvable:$true] %s32_s12 }
   0x7   :  { %26 = vst [vmem:[#allocation5 + $0x8] sm:$0xff] %v24_v1 }
   0x8   :  { %37 = dma.vmem_to_hbm [thread:$0]  %s33_s12, 256, %s35_s15, [#allocation4]  }
   0x9   :  { %96 = dma.done.wait [#allocation4], 256  }
   0xa   :  { %97 = vsyncadd [#allocation4], 4294967040 }
   0xb   :  { %42 = vsyncpa [#allocation3], 1 }
   0xc   :  { %43 = vsyncpa [#allocation4], 1 }

</bundles_post_ra>
